<compile_context>
chip_gen: v5e
topology: v5e:2x2
jax: 0.10.0
libtpu: 0.0.40
codegen_flags: <defaults>
</compile_context>

<pallas_src>
import functools

import jax
import jax.numpy as jnp
from jax.experimental import pallas as pl
from jax.experimental.pallas import tpu as pltpu


def _tap_kernel(x_ref, w1_ref, b1_ref, w2t_ref, out_ref, *, t_valid):
    # Upcast once, right after the (pipelined) block load; all math is f32.
    x = x_ref[...].astype(jnp.float32)                    # (tb, Tp, D)
    tb, tp, d = x.shape
    h_dim = w1_ref.shape[1]

    # Attention MLP layer 1 as ONE flattened (tb*Tp, D) @ (D, H) MXU matmul.
    # Tp is a multiple of 8 (wrapper pads), so this reshape and its inverse are
    # layout-free for the f32 (8, 128) tiling.
    xf = x.reshape(tb * tp, d)
    h = jnp.dot(xf, w1_ref[...], preferred_element_type=jnp.float32)
    h = jnp.maximum(h + b1_ref[...], 0.0)                 # (tb*Tp, H)

    # Layer 2 (H -> 1): lane-axis multiply-reduce against pre-transposed w2.
    # The H->1 scalar bias is dropped: softmax over T is shift-invariant.
    h3 = h.reshape(tb, tp, h_dim)
    logits = jnp.sum(h3 * w2t_ref[...][None], axis=-1)    # (tb, Tp)

    if tp > t_valid:  # static Python branch: only traced when T was padded
        frame = jax.lax.broadcasted_iota(jnp.int32, (tb, tp), 1)
        logits = jnp.where(frame < t_valid, logits, -jnp.inf)

    # Softmax over the temporal axis; the divide goes to the EUP.
    m = jnp.max(logits, axis=-1, keepdims=True)
    e = jnp.exp(logits - m)
    w = e * pl.reciprocal(jnp.sum(e, axis=-1, keepdims=True), approx=True)

    # Attention-weighted temporal sum, stored lane-dense as (tb, D).
    out_ref[...] = jnp.sum(x * w[:, :, None], axis=1).astype(out_ref.dtype)


def _auto_block_rows(bf, t, d, h, x_bytes, out_bytes,
                     budget_bytes=20 * 1024 * 1024):
    """Largest multiple-of-8 batch tile whose VMEM footprint (double-buffered
    I/O blocks + f32 intermediates + double-buffered weights) fits the budget,
    additionally capped so the grid has >= 2 steps (v7x dual TensorCores and a
    real double-buffered DMA pipeline)."""
    if bf <= 8:
        return bf
    per_row = (2 * t * d * x_bytes       # x block, double buffered
               + 2 * d * out_bytes       # out block, double buffered
               + t * d * 4               # f32 upcast of x
               + 2 * t * h * 4           # h + possible relayout copy
               + 2 * t * 4)              # logits / softmax weights
    weight_bytes = 2 * (d * h + 2 * h) * 4
    cap_budget = max(8, ((budget_bytes - weight_bytes) // per_row) // 8 * 8)
    cap_parallel = max(8, (bf // 2) // 8 * 8)     # guarantee >= 2 grid steps
    return int(min(cap_budget, cap_parallel))


def temporal_attention_pooling(x, w1, b1, w2t, b2=None, *,
                               block_rows=None, out_dtype=jnp.float32):
    """FastVQA TemporalAttentionPooling forward: (BF, T, D) -> (BF, D).

    w1:  (D, D//4), b1: (1, D//4) -- first Linear.
    w2t: (1, D//4)                -- second Linear's weight, pre-transposed.
    b2:  ignored -- softmax over T is invariant to the scalar H->1 bias.
    x may be bf16 (recommended; the kernel is HBM-bandwidth bound) or f32.
    """
    del b2  # mathematically dead under the temporal softmax
    bf, t, d = x.shape
    h_dim = w1.shape[1]
    x_bytes = jnp.dtype(x.dtype).itemsize
    out_bytes = jnp.dtype(out_dtype).itemsize

    # Pad T to a multiple of 8 so in-kernel reshapes are layout-free; padded
    # frames are masked to -inf before the softmax (so they get zero weight).
    t_pad = -(-t // 8) * 8
    if t_pad != t:
        x = jnp.pad(x, ((0, 0), (0, t_pad - t), (0, 0)))

    if block_rows is None:
        block_rows = _auto_block_rows(bf, t_pad, d, h_dim, x_bytes, out_bytes)
    grid = pl.cdiv(bf, block_rows)

    # Explicit scoped-VMEM limit sized from the actual footprint (raises v5e's
    # 16 MiB default; stays comfortably under v7x's 64 MiB physical).
    footprint = (2 * block_rows * t_pad * d * x_bytes
                 + 2 * block_rows * d * out_bytes
                 + block_rows * t_pad * (d + 2 * h_dim + 2) * 4
                 + 2 * (d * h_dim + 2 * h_dim) * 4)
    vmem_limit = int(max(32 * 1024 * 1024, footprint + 4 * 1024 * 1024))

    def const(shape):
        return pl.BlockSpec(shape, lambda i, s=shape: (0,) * len(s))

    kernel = functools.partial(_tap_kernel, t_valid=t)

    return pl.pallas_call(
        kernel,
        out_shape=jax.ShapeDtypeStruct((bf, d), out_dtype),
        grid_spec=pltpu.PrefetchScalarGridSpec(
            num_scalar_prefetch=0,
            grid=(grid,),
            in_specs=[
                pl.BlockSpec((block_rows, t_pad, d), lambda i: (i, 0, 0)),
                const((d, h_dim)),     # w1
                const((1, h_dim)),     # b1
                const((1, h_dim)),     # w2 (pre-transposed)
            ],
            out_specs=pl.BlockSpec((block_rows, d), lambda i: (i, 0)),
        ),
        compiler_params=pltpu.CompilerParams(
            dimension_semantics=("parallel",),
            vmem_limit_bytes=vmem_limit),
    )(x, w1, b1, w2t)


def _reference(x, w1, b1, w2t, b2):
    a = jnp.maximum(jnp.einsum('btd,dh->bth', x, w1) + b1, 0.0)
    logits = jnp.einsum('bth,h->bt', a, w2t[0]) + b2[0]
    w = jax.nn.softmax(logits, axis=1)
    return jnp.sum(x * w[:, :, None], axis=1)


if __name__ == "__main__":
    key = jax.random.PRNGKey(0)
    kx, k1, kb1, k2, kb2 = jax.random.split(key, 5)

    BF, T, D = 16, 8, 128          # (batch*fragments, frames, feat_dim)
    H = D // 4
    x_f32 = jax.random.normal(kx, (BF, T, D), jnp.float32)
    x = x_f32.astype(jnp.bfloat16)   # bandwidth-optimal storage dtype
    w1 = jax.random.normal(k1, (D, H), jnp.float32) * 0.05
    b1 = jax.random.normal(kb1, (1, H), jnp.float32) * 0.05
    w2t = jax.random.normal(k2, (1, H), jnp.float32) * 0.05   # Linear(H,1).weight.T
    b2 = jax.random.normal(kb2, (1,), jnp.float32) * 0.05

    fn = jax.jit(temporal_attention_pooling)
    out = fn(x, w1, b1, w2t, b2)     # auto tile -> block_rows=8, grid=(2,)
    jax.block_until_ready(out)

    # Reference keeps b2 (the kernel drops it); softmax shift-invariance makes
    # them identical.  Reference math is f32 on the same bf16-quantized x.
    expected = _reference(x.astype(jnp.float32), w1, b1, w2t, b2)
    assert out.shape == (BF, D)
    assert bool(jnp.all(jnp.isfinite(out)))
    err = float(jnp.max(jnp.abs(out - expected)))
    assert err < 5e-3, err
    print("KERNEL_OK")
</pallas_src>

<mosaic_0001>
module attributes {stable_mosaic.version = 11 : i64} {
  func.func @_tap_kernel(%arg0: i32, %arg1: memref<8x8x128xbf16, #tpu.memory_space<vmem>>, %arg2: memref<128x32xf32, #tpu.memory_space<vmem>>, %arg3: memref<1x32xf32, #tpu.memory_space<vmem>>, %arg4: memref<1x32xf32, #tpu.memory_space<vmem>>, %arg5: memref<8x128xf32, #tpu.memory_space<vmem>>) attributes {dimension_semantics = [#tpu.dimension_semantics<parallel>], iteration_bounds = array<i64: 2>, scalar_prefetch = 0 : i64, scratch_operands = 0 : i64, tpu.core_type = #tpu.core_type<tc>, window_params = [{transform_indices = @transform_0, window_bounds = array<i64: 8, 8, 128>}, {pipeline_mode = #tpu.pipeline_mode<synchronous>, transform_indices = @transform_1, window_bounds = array<i64: 128, 32>}, {pipeline_mode = #tpu.pipeline_mode<synchronous>, transform_indices = @transform_2, window_bounds = array<i64: 1, 32>}, {pipeline_mode = #tpu.pipeline_mode<synchronous>, transform_indices = @transform_3, window_bounds = array<i64: 1, 32>}, {transform_indices = @transform_4, window_bounds = array<i64: 8, 128>}]} {
    %c0 = arith.constant 0 : index
    %c0_0 = arith.constant 0 : index
    %c0_1 = arith.constant 0 : index
    %0 = vector.load %arg1[%c0, %c0_0, %c0_1] : memref<8x8x128xbf16, #tpu.memory_space<vmem>>, vector<8x8x128xbf16>
    %1 = arith.extf %0 : vector<8x8x128xbf16> to vector<8x8x128xf32>
    %2 = vector.shape_cast %1 : vector<8x8x128xf32> to vector<64x128xf32>
    %c0_2 = arith.constant 0 : index
    %c0_3 = arith.constant 0 : index
    %3 = vector.load %arg2[%c0_2, %c0_3] : memref<128x32xf32, #tpu.memory_space<vmem>>, vector<128x32xf32>
    %cst = arith.constant dense<0.000000e+00> : vector<64x32xf32>
    %4 = tpu.matmul %2, %3, %cst {dimension_numbers = #tpu.dot_dimension_numbers<[1], [0], [0], [1], [0, 0, 1, 1], [], []>} : vector<64x128xf32>, vector<128x32xf32>, vector<64x32xf32> -> vector<64x32xf32>
    %c0_4 = arith.constant 0 : index
    %c0_5 = arith.constant 0 : index
    %5 = vector.load %arg3[%c0_4, %c0_5] : memref<1x32xf32, #tpu.memory_space<vmem>>, vector<1x32xf32>
    %6 = vector.broadcast %5 : vector<1x32xf32> to vector<64x32xf32>
    %7 = arith.addf %4, %6 : vector<64x32xf32>
    %cst_6 = arith.constant 0.000000e+00 : f32
    %8 = vector.broadcast %cst_6 : f32 to vector<64x32xf32>
    %9 = arith.maximumf %7, %8 : vector<64x32xf32>
    %10 = vector.shape_cast %9 : vector<64x32xf32> to vector<8x8x32xf32>
    %c0_7 = arith.constant 0 : index
    %c0_8 = arith.constant 0 : index
    %11 = vector.load %arg4[%c0_7, %c0_8] : memref<1x32xf32, #tpu.memory_space<vmem>>, vector<1x32xf32>
    %12 = vector.shape_cast %11 : vector<1x32xf32> to vector<1x1x32xf32>
    %13 = vector.broadcast %12 : vector<1x1x32xf32> to vector<8x8x32xf32>
    %14 = arith.mulf %10, %13 : vector<8x8x32xf32>
    %cst_9 = arith.constant dense<0.000000e+00> : vector<8x8xf32>
    %15 = vector.multi_reduction <add>, %14, %cst_9 [2] : vector<8x8x32xf32> to vector<8x8xf32>
    %cst_10 = arith.constant dense<0xFF800000> : vector<8xf32>
    %16 = vector.multi_reduction <maximumf>, %15, %cst_10 [1] : vector<8x8xf32> to vector<8xf32>
    %17 = vector.shape_cast %16 : vector<8xf32> to vector<8x1xf32>
    %18 = vector.broadcast %17 : vector<8x1xf32> to vector<8x8xf32>
    %19 = arith.subf %15, %18 : vector<8x8xf32>
    %20 = math.exp %19 : vector<8x8xf32>
    %cst_11 = arith.constant dense<0.000000e+00> : vector<8xf32>
    %21 = vector.multi_reduction <add>, %20, %cst_11 [1] : vector<8x8xf32> to vector<8xf32>
    %22 = vector.shape_cast %21 : vector<8xf32> to vector<8x1xf32>
    %23 = tpu.reciprocal %22 {approx = true} : vector<8x1xf32> -> vector<8x1xf32>
    %24 = vector.broadcast %23 : vector<8x1xf32> to vector<8x8xf32>
    %25 = arith.mulf %20, %24 : vector<8x8xf32>
    %26 = vector.shape_cast %25 : vector<8x8xf32> to vector<8x8x1xf32>
    %27 = vector.broadcast %26 : vector<8x8x1xf32> to vector<8x8x128xf32>
    %28 = arith.mulf %1, %27 : vector<8x8x128xf32>
    %cst_12 = arith.constant dense<0.000000e+00> : vector<8x128xf32>
    %29 = vector.multi_reduction <add>, %28, %cst_12 [1] : vector<8x8x128xf32> to vector<8x128xf32>
    %c0_13 = arith.constant 0 : index
    %c0_14 = arith.constant 0 : index
    %30 = vector.load %arg5[%c0_13, %c0_14] : memref<8x128xf32, #tpu.memory_space<vmem>>, vector<8x128xf32>
    tpu.vector_store %arg5[%c0_13, %c0_14], %29 {strides = array<i32>} : memref<8x128xf32, #tpu.memory_space<vmem>>, vector<8x128xf32>,
    return
  }
  func.func @transform_0(%arg0: i32) -> (i32, i32, i32) {
    %c0_i32 = arith.constant 0 : i32
    %c0_i32_0 = arith.constant 0 : i32
    %c0_i32_1 = arith.constant 0 : i32
    return %arg0, %c0_i32, %c0_i32_0 : i32, i32, i32
  }
  func.func @transform_1(%arg0: i32) -> (i32, i32) {
    %c0_i32 = arith.constant 0 : i32
    %c0_i32_0 = arith.constant 0 : i32
    %c0_i32_1 = arith.constant 0 : i32
    return %c0_i32, %c0_i32_0 : i32, i32
  }
  func.func @transform_2(%arg0: i32) -> (i32, i32) {
    %c0_i32 = arith.constant 0 : i32
    %c0_i32_0 = arith.constant 0 : i32
    %c0_i32_1 = arith.constant 0 : i32
    return %c0_i32, %c0_i32_0 : i32, i32
  }
  func.func @transform_3(%arg0: i32) -> (i32, i32) {
    %c0_i32 = arith.constant 0 : i32
    %c0_i32_0 = arith.constant 0 : i32
    %c0_i32_1 = arith.constant 0 : i32
    return %c0_i32, %c0_i32_0 : i32, i32
  }
  func.func @transform_4(%arg0: i32) -> (i32, i32) {
    %c0_i32 = arith.constant 0 : i32
    %c0_i32_0 = arith.constant 0 : i32
    return %arg0, %c0_i32 : i32, i32
  }
}

</mosaic_0001>

<bundles_post_ra>
// kernel: temporal_attention_pooling.1
= control target key start
LH: loop header
LB: loop body
LE: loop exit
PB: predicated region body
PF: predicated region fallthrough
CT: control target
= control target key end

     0   :  { %9 = vsyncpa [#allocation3], 0  ;;  %s1141_s0 = inlined_call_operand.vmem [shape: bf16[16,8,128], index: 0, kind: input, shape index: {}]   ;;  %s1142_s1 = inlined_call_operand.vmem [shape: f32[128,32], index: 1, kind: input, shape index: {}]   ;;  %s1143_s2 = inlined_call_operand.vmem [shape: f32[1,32], index: 2, kind: input, shape index: {}]   ;;  %s1144_s3 = inlined_call_operand.vmem [shape: f32[1,32], index: 3, kind: input, shape index: {}]   ;;  %s1145_s4 = inlined_call_operand.hbm [shape: f32[16,128], index: 4, kind: output, shape index: {}]  }
   0x1   :  { %11 = vsyncpa [#allocation3 + $0x1], 0  ;;  %s894_s15 = smov 0   ;;  %s896_s16 = smov 0  }
   0x2   :  { %s898_s17 = smov 0   ;;  %s900_s18 = smov 0  }
   0x3 LB: > { %s662_s19 = sadd.s32 4294967295, %s866_s18   ;;  %s663_s20 = sadd.s32 4294967294, %s866_s18   ;;  %s866_s18 = sphi %s900_s18, %s1151_s18   ;;  %s862_s17 = sphi %s898_s17, %s1150_s17   ;;  %s858_s16 = sphi %s896_s16, %s1149_s16   ;;  %s854_s15 = sphi %s894_s15, %s1148_s15  }
   0x4   : > { %s917_s21 = sadd.s32 1, %s866_s18   ;;  %s113_s22 = sadd.s32 1, %s862_s17 }
   0x5   : > { %s110_s23 = ssub.s32 %s866_s18, %s917_s21  ;;  %p123_p0 = scmp.ne.s32.totalorder %s862_s17, %s858_s16 }
   0x6   : > { %p111_p1 = scmp.eq.s32.totalorder %s110_s23, 0  ;;  %p124_p2 = scmp.eq.s32.totalorder %s662_s19, 1 }
   0x7   : > { %p129_p3 = scmp.ne.s32.totalorder %s858_s16, %s854_s15  ;;  %p130_p4 = scmp.eq.s32.totalorder %s663_s20, 1 }
   0x8   : > { %s929_s24 = scalar_select %p111_p1, %s862_s17, %s113_s22  }
   0x9   : > { %p931_p5 = por %p124_p2, %p123_p0  ;;  %p935_p6 = por %p130_p4, %p129_p3 }
   0xa   : > { %p666_p7 = scmp.ge.s32.totalorder %s866_s18, 1  ;;  %p166_p8 = scmp.lt.s32.totalorder %s866_s18, 3 }
   0xc   : > { %p167_p9 = pnand %p666_p7, %p166_p8 }
   0xd   : > { %s961_s13 = sshll.u32 (!%p167_p9), %s662_s19, 3  ;;  %s189_s8 = sand.u32 (!%p167_p9), 1, %s858_s16  }
   0xe   : > { %170 = sbr.rel (%p167_p9) target bundleno = 872 (0x368), region = 36  ;;  %p193_p10 = scmp.lt.s32.totalorder (!%p167_p9), %s961_s13, 15 }
   0xf   : > { %s667_s9 = sshll.u32 (!%p167_p9), %s189_s8, 3  ;;  %s599_s12 = scalar_lea.hbm (!%p167_p9), %s1145_s4, %s961_s13 }
  0x10   : > { %s191_s14 = scalar_lea.vmem (!%p167_p9), [#allocation2], %s667_s9  ;;  %s603_s22 = sshll.u32 (!%p167_p9), %s599_s12, 4  ;;  %s604_s22 = int_to_ptr.hbm [resolvable:$true] %s603_s22 }
  0x11   : > { %s818_s23 = sshra.s32 (!%p167_p9), %s604_s22, 4  ;;  %s824_s29 = scalar_lea.hbm (!%p167_p9), %s1145_s4, 16  ;;  %s819_s23 = int_to_ptr.hbm [resolvable:$true] %s818_s23 }
  0x12   : > { %s820_s19 = scalar_lea.hbm (!%p167_p9), %s819_s23, 8  ;;  %p825_p0 = scmp.lt.s32.totalorder (!%p167_p9), %s819_s23, %s1145_s4 }
  0x13   : > { %v229_v0 = vld [vmem:[%s1142_s1 + $0x78] sm:$0xff]  ;;  %v228_v1 = vld [vmem:[%s1142_s1 + $0x70] sm:$0xff]  ;;  %v227_v2 = vld [vmem:[%s1142_s1 + $0x68] sm:$0xff]  ;;  %s194_s28 = scalar_select %p193_p10, %s961_s13, 15  ;;  %vm295_vm0 = vcmask 261120   ;;  %vm338_vm1 = vcmask 1041409  }
  0x14   : > { %234 = vmatpush.msra.mxu0 %v229_v0  ;;  %694 = vmatpush.msra.mxu2 %v229_v0  ;;  %v226_v3 = vld [vmem:[%s1142_s1 + $0x60] sm:$0xff]  ;;  %v225_v4 = vld [vmem:[%s1142_s1 + $0x58] sm:$0xff]  ;;  %v224_v5 = vld [vmem:[%s1142_s1 + $0x50] sm:$0xff]  ;;  %vm340_vm2 = vcmask 1042434   ;;  %vm342_vm3 = vcmask 1043459   ;;  %vm344_vm4 = vcmask 1044484   ;;  %p821_p11 = scmp.ne.s32.totalorder %s819_s23, %s820_s19  ;;  %p826_p1 = scmp.lt.s32.totalorder %s824_s29, %s820_s19 }
  0x15   : > { %693 = vmatpush.msra.mxu1 %v229_v0  ;;  %695 = vmatpush.msra.mxu3 %v229_v0  ;;  %v223_v6 = vld [vmem:[%s1142_s1 + $0x48] sm:$0xff]  ;;  %v222_v7 = vld [vmem:[%s1142_s1 + $0x40] sm:$0xff]  ;;  %v221_v8 = vld [vmem:[%s1142_s1 + $0x38] sm:$0xff]  ;;  %s669_s7 = sshll.u32 %s194_s28, 2  ;;  %vm346_vm5 = vcmask 1045509   ;;  %vm348_vm6 = vcmask 1046534  }
  0x16   : > { %235 = vmatpush.msra.mxu0 %v228_v1  ;;  %697 = vmatpush.msra.mxu2 %v228_v1  ;;  %v220_v9 = vld [vmem:[%s1142_s1 + $0x30] sm:$0xff]  ;;  %v219_v10 = vld [vmem:[%s1142_s1 + $0x28] sm:$0xff]  ;;  %v218_v11 = vld [vmem:[%s1142_s1 + $0x20] sm:$0xff]  ;;  %s196_s20 = scalar_lea.vmem %s1141_s0, %s669_s7  ;;  %vm350_vm7 = vcmask 1047559   ;;  %vm353_vm8 = vcmask 64512   ;;  %s589_s13 = scalar_lea.sflag [#allocation3], %s189_s8 }
  0x17   : > { %696 = vmatpush.msra.mxu1 %v228_v1  ;;  %698 = vmatpush.msra.mxu3 %v228_v1  ;;  %v217_v12 = vld [vmem:[%s1142_s1 + $0x18] sm:$0xff]  ;;  %v216_v13 = vld [vmem:[%s1142_s1 + $0x10] sm:$0xff]  ;;  %v992_v14 = vld [vmem:[%s196_s20] sm:$0xff]   ;;  %p822_p12 = pnand %p821_p11, %p931_p5  ;;  %p827_p2 = por %p826_p1, %p825_p0 }
  0x18   : > { %236 = vmatpush.msra.mxu0 %v227_v2  ;;  %700 = vmatpush.msra.mxu2 %v227_v2  ;;  %v215_v15 = vld [vmem:[%s1142_s1 + $0x8] sm:$0xff]  ;;  %v997_v16 = vld [vmem:[%s196_s20 + $0x10] sm:$0xff]   ;;  %v214_v18 = vld [vmem:[%s1142_s1] sm:$0xff]  ;;  %v676_v19 = vunpack.c.l.bf16 %v992_v14  ;;  %v677_v24 = vunpack.c.h.bf16 %v992_v14 }
  0x19   : > { %699 = vmatpush.msra.mxu1 %v227_v2  ;;  %701 = vmatpush.msra.mxu3 %v227_v2  ;;  %v999_v17 = vld [vmem:[%s196_s20 + $0x8] sm:$0xff]   ;;  %v1005_v20 = vld [vmem:[%s196_s20 + $0x18] sm:$0xff]   ;;  %v684_v21 = vunpack.c.l.bf16 %v997_v16  ;;  %v685_v25 = vunpack.c.h.bf16 %v997_v16  ;;  %v784_v28 = vld [vmem:[%s1143_s2] ss:$0 sm:$0xff]  ;;  %s601_s20 = sshll.u32 %s191_s14, 4  ;;  %p823_p13 = pneg %p822_p12  ;;  %s602_s20 = int_to_ptr.vmem [resolvable:$true] %s601_s20 }
  0x1a   : > { %237 = vmatpush.msra.mxu0 %v226_v3  ;;  %703 = vmatpush.msra.mxu2 %v226_v3  ;;  %v680_v22 = vunpack.c.l.bf16 %v999_v17  ;;  %v688_v23 = vunpack.c.l.bf16 %v1005_v20  ;;  %v681_v26 = vunpack.c.h.bf16 %v999_v17  ;;  %v689_v27 = vunpack.c.h.bf16 %v1005_v20  ;;  %v785_v32 = vld [vmem:[%s1144_s3] ss:$0 sm:$0xff] }
  0x1b   : > { %702 = vmatpush.msra.mxu1 %v226_v3  ;;  %704 = vmatpush.msra.mxu3 %v226_v3  ;;  %p828_p3 = pnand %p827_p2, %p823_p13 }
  0x1c   : > { %238 = vmatpush.msra.mxu0 %v225_v4  ;;  %706 = vmatpush.msra.mxu2 %v225_v4 }
  0x1d   : > { %705 = vmatpush.msra.mxu1 %v225_v4  ;;  %707 = vmatpush.msra.mxu3 %v225_v4 }
  0x1e   : > { %239 = vmatpush.msra.mxu0 %v224_v5  ;;  %709 = vmatpush.msra.mxu2 %v224_v5 }
  0x1f   : > { %708 = vmatpush.msra.mxu1 %v224_v5  ;;  %710 = vmatpush.msra.mxu3 %v224_v5 }
  0x20   : > { %240 = vmatpush.msra.mxu0 %v223_v6  ;;  %712 = vmatpush.msra.mxu2 %v223_v6 }
  0x21   : > { %711 = vmatpush.msra.mxu1 %v223_v6  ;;  %713 = vmatpush.msra.mxu3 %v223_v6 }
  0x22   : > { %241 = vmatpush.msra.mxu0 %v222_v7  ;;  %715 = vmatpush.msra.mxu2 %v222_v7 }
  0x23   : > { %714 = vmatpush.msra.mxu1 %v222_v7  ;;  %716 = vmatpush.msra.mxu3 %v222_v7  ;;  %v328_v7 = vlaneseq }
  0x24   : > { %242 = vmatpush.msra.mxu0 %v221_v8  ;;  %718 = vmatpush.msra.mxu2 %v221_v8 }
  0x25   : > { %717 = vmatpush.msra.mxu1 %v221_v8  ;;  %719 = vmatpush.msra.mxu3 %v221_v8 }
  0x26   : > { %243 = vmatpush.msra.mxu0 %v220_v9  ;;  %721 = vmatpush.msra.mxu2 %v220_v9 }
  0x27   : > { %720 = vmatpush.msra.mxu1 %v220_v9  ;;  %722 = vmatpush.msra.mxu3 %v220_v9  ;;  %v1044_v9 = vand.u32 127, %v328_v7 }
  0x28   : > { %244 = vmatpush.msra.mxu0 %v219_v10  ;;  %724 = vmatpush.msra.mxu2 %v219_v10 }
  0x29   : > { %723 = vmatpush.msra.mxu1 %v219_v10  ;;  %725 = vmatpush.msra.mxu3 %v219_v10 }
  0x2a   : > { %245 = vmatpush.msra.mxu0 %v218_v11  ;;  %727 = vmatpush.msra.mxu2 %v218_v11 }
  0x2b   : > { %726 = vmatpush.msra.mxu1 %v218_v11  ;;  %728 = vmatpush.msra.mxu3 %v218_v11 }
  0x2c   : > { %246 = vmatpush.msra.mxu0 %v217_v12  ;;  %730 = vmatpush.msra.mxu2 %v217_v12 }
  0x2d   : > { %729 = vmatpush.msra.mxu1 %v217_v12  ;;  %731 = vmatpush.msra.mxu3 %v217_v12 }
  0x2e   : > { %247 = vmatpush.msra.mxu0 %v216_v13  ;;  %733 = vmatpush.msra.mxu2 %v216_v13 }
  0x2f   : > { %732 = vmatpush.msra.mxu1 %v216_v13  ;;  %734 = vmatpush.msra.mxu3 %v216_v13 }
  0x30   : > { %248 = vmatpush.msra.mxu0 %v215_v15  ;;  %736 = vmatpush.msra.mxu2 %v215_v15 }
  0x31   : > { %735 = vmatpush.msra.mxu1 %v215_v15  ;;  %737 = vmatpush.msra.mxu3 %v215_v15 }
  0x32   : > { %249 = vmatpush.msra.mxu0 %v214_v18  ;;  %739 = vmatpush.msra.mxu2 %v214_v18 }
  0x33   : > { %738 = vmatpush.msra.mxu1 %v214_v18  ;;  %250 = vmatmul.f32.vlgmr.msra.gmra.mxu0 %v676_v19 }
  0x34   : > { %262 = vmatmul.f32.vlgmr.msra.gmra.mxu2 %v684_v21  ;;  %256 = vmatmul.f32.vlgmr.msra.gmra.mxu1 %v680_v22 }
  0x35   : > { %740 = vmatpush.msra.mxu3 %v214_v18 }
  0x36   : > { %268 = vmatmul.f32.vlgmr.msra.gmra.mxu3 %v688_v23 }
  0x3b   : > { %253 = vmatmul.f32.gmra.mxu0 %v677_v24 }
  0x3c   : > { %265 = vmatmul.f32.gmra.mxu2 %v685_v25  ;;  %259 = vmatmul.f32.gmra.mxu1 %v681_v26 }
  0x3e   : > { %271 = vmatmul.f32.gmra.mxu3 %v689_v27 }
  0xb0   : > { %v251_v29 = vpop.f32.mrf.mxu0 }
  0xb1   : > { %v252_v30 = vadd.f32 %v784_v28, %v251_v29  ;;  %v257_v31 = vpop.f32.mrf.mxu1 }
  0xb2   : > { %v258_v33 = vadd.f32 %v784_v28, %v257_v31 }
  0xb3   : > { %v275_v34 = vmax.f32 %v252_v30, 0.0 }
  0xb4   : > { %v277_v35 = vmax.f32 %v258_v33, 0.0 }
  0xb5   : > { %v287_v36 = vmul.f32 %v785_v32, %v275_v34 }
  0xb6   : > { %v289_v37 = vmul.f32 %v785_v32, %v277_v35 }
  0xb7   : > { %v263_v38 = vpop.f32.mrf.mxu2  ;;  %v296_v39 = vsel %vm295_vm0, %v287_v36, 0.0 }
  0xb8   : > { %v264_v40 = vadd.f32 %v784_v28, %v263_v38  ;;  %v254_v41 = vpop.f32.mrf.mxu0  ;;  %297 = vadd.xlane.f32.xlu0 %v296_v39  ;;  %v302_v42 = vsel %vm295_vm0, %v289_v37, 0.0 }
  0xb9   : > { %v255_v43 = vadd.f32 %v784_v28, %v254_v41  ;;  %v260_v44 = vpop.f32.mrf.mxu1  ;;  %v269_v45 = vpop.f32.mrf.mxu3  ;;  %303 = vadd.xlane.f32.xlu1 %v302_v42 }
  0xba   : > { %v279_v46 = vmax.f32 %v264_v40, 0.0  ;;  %v261_v47 = vadd.f32 %v784_v28, %v260_v44  ;;  %v270_v49 = vadd.f32 %v784_v28, %v269_v45  ;;  %v868_v44 = vmov 0  }
  0xbb   : > { %v276_v48 = vmax.f32 %v255_v43, 0.0  ;;  %783 = vset.pattern.permute.xlu2 %v868_v44  ;;  %782 = vset.pattern.permute.xlu1 %v868_v44 }
  0xbc   : > { %v278_v50 = vmax.f32 %v261_v47, 0.0  ;;  %v291_v51 = vmul.f32 %v785_v32, %v279_v46  ;;  %v281_v55 = vmax.f32 %v270_v49, 0.0  ;;  %781 = vset.pattern.permute.xlu0 %v868_v44 }
  0xbd   : > { %v288_v52 = vmul.f32 %v785_v32, %v276_v48 }
  0xbe   : > { %v308_v53 = vsel %vm295_vm0, %v291_v51, 0.0  ;;  %v290_v54 = vmul.f32 %v785_v32, %v278_v50  ;;  %v293_v63 = vmul.f32 %v785_v32, %v281_v55 }
  0xbf   : > { %v266_v56 = vpop.f32.mrf.mxu2  ;;  %309 = vadd.xlane.f32.xlu2 %v308_v53  ;;  %v299_v57 = vsel %vm295_vm0, %v288_v52, 0.0 }
  0xc0   : > { %v267_v58 = vadd.f32 %v784_v28, %v266_v56  ;;  %300 = vadd.xlane.f32.xlu0 %v299_v57  ;;  %v305_v59 = vsel %vm295_vm0, %v290_v54, 0.0  ;;  %v314_v4 = vsel %vm295_vm0, %v293_v63, 0.0 }
  0xc1   : > { %v272_v60 = vpop.f32.mrf.mxu3  ;;  %306 = vadd.xlane.f32.xlu1 %v305_v59 }
  0xc2   : > { %v280_v61 = vmax.f32 %v267_v58, 0.0  ;;  %v273_v62 = vadd.f32 %v784_v28, %v272_v60 }
  0xc4   : > { %v282_v0 = vmax.f32 %v273_v62, 0.0  ;;  %v292_v1 = vmul.f32 %v785_v32, %v280_v61 }
  0xc6   : > { %v311_v2 = vsel %vm295_vm0, %v292_v1, 0.0  ;;  %v294_v3 = vmul.f32 %v785_v32, %v282_v0 }
  0xc7   : > { %312 = vadd.xlane.f32.xlu2 %v311_v2 }
  0xc8   : > { %315 = vadd.xlane.f32.xlu0 %v314_v4  ;;  %v317_v5 = vsel %vm295_vm0, %v294_v3, 0.0 }
  0xc9   : > { %318 = vadd.xlane.f32.xlu1 %v317_v5 }
 0x12b   : > { %v298_v6 = vpop.xlane.xlu0 %297 }
 0x12c   : > { %v304_v8 = vpop.xlane.xlu1 %303  ;;  %v330_v12 = vperm.slane %v298_v6, %v1044_v9 }
 0x12d   : > { %v332_v18 = vperm.slane %v304_v8, %v1044_v9 }
 0x132   : > { %v310_v10 = vpop.xlane.xlu2 %309 }
 0x133   : > { %v301_v11 = vpop.xlane.xlu0 %300  ;;  %v334_v32 = vperm.slane %v310_v10, %v1044_v9 }
 0x134   : > { %v331_v13 = vperm.slane %v301_v11, %v1044_v9  ;;  %v307_v15 = vpop.xlane.xlu1 %306 }
 0x135   : > { %v333_v28 = vperm.slane %v307_v15, %v1044_v9 }
 0x136   : > { %v339_v29 = vsel %vm338_vm1, %v331_v13, %v330_v12 }
 0x137   : > { %v341_v30 = vsel %vm340_vm2, %v332_v18, %v339_v29 }
 0x138   : > { %v343_v31 = vsel %vm342_vm3, %v333_v28, %v341_v30 }
 0x139   : > { %v345_v38 = vsel %vm344_vm4, %v334_v32, %v343_v31 }
 0x13a   : > { %v313_v33 = vpop.xlane.xlu2 %312 }
 0x13b   : > { %v335_v34 = vperm.slane %v313_v33, %v1044_v9  ;;  %v316_v35 = vpop.xlane.xlu0 %315 }
 0x13c   : > { %v336_v36 = vperm.slane %v316_v35, %v1044_v9  ;;  %v319_v37 = vpop.xlane.xlu1 %318 }
 0x13d   : > { %v337_v39 = vperm.slane %v319_v37, %v1044_v9  ;;  %v347_v40 = vsel %vm346_vm5, %v335_v34, %v345_v38 }
 0x13e   : > { %v349_v41 = vsel %vm348_vm6, %v336_v36, %v347_v40 }
 0x13f   : > { %v351_v42 = vsel %vm350_vm7, %v337_v39, %v349_v41 }
 0x140   : > { %v354_v43 = vsel %vm353_vm8, %v351_v42, -inf }
 0x141   : > { %355 = vmax.xlane.f32.xlu2 %v354_v43 }
 0x1b4   : > { %v356_v45 = vpop.xlane.xlu2 %355 }
 0x1b5   : > { %v360_v46 = vperm.slane %v356_v45, 2  ;;  %v359_v47 = vperm.slane %v356_v45, 1  ;;  %v358_v48 = vperm.slane %v356_v45, 0  ;;  %v361_v52 = vperm.slane %v356_v45, 3 }
 0x1b6   : > { %v362_v53 = vperm.slane %v356_v45, 4  ;;  %v365_v54 = vperm.slane %v356_v45, 7  ;;  %v363_v62 = vperm.slane %v356_v45, 5  ;;  %v364_v0 = vperm.slane %v356_v45, 6 }
 0x1b7   : > { %v376_v49 = vsub.f32 %v304_v8, %v360_v46  ;;  %v375_v50 = vsub.f32 %v301_v11, %v359_v47  ;;  %v374_v51 = vsub.f32 %v298_v6, %v358_v48  ;;  %v377_v58 = vsub.f32 %v307_v15, %v361_v52 }
 0x1b8   : > { %v378_v59 = vsub.f32 %v310_v10, %v362_v53  ;;  %v381_v60 = vsub.f32 %v319_v37, %v365_v54  ;;  %v379_v5 = vsub.f32 %v313_v33, %v363_v62  ;;  %v380_v6 = vsub.f32 %v316_v35, %v364_v0 }
 0x1b9   : > { %v386_v55 = vmul.f32 1.442695, %v376_v49  ;;  %v384_v56 = vmul.f32 1.442695, %v375_v50  ;;  %v382_v57 = vmul.f32 1.442695, %v374_v51 }
 0x1ba   : > { %v388_v61 = vmul.f32 1.442695, %v377_v58  ;;  %v390_v63 = vmul.f32 1.442695, %v378_v59  ;;  %v396_v2 = vmul.f32 1.442695, %v381_v60 }
 0x1bb   : > { %786 = vpow2.f32 %v386_v55  ;;  %v392_v7 = vmul.f32 1.442695, %v379_v5  ;;  %v394_v8 = vmul.f32 1.442695, %v380_v6 }
 0x1bc   : > { %788 = vpow2.f32 %v384_v56 }
 0x1bd   : > { %790 = vpow2.f32 %v382_v57 }
 0x1be   : > { %792 = vpow2.f32 %v388_v61 }
 0x1bf   : > { %794 = vpow2.f32 %v390_v63 }
 0x1c0   : > { %796 = vpow2.f32 %v396_v2 }
 0x1c1   : > { %v1062_v1 = vpop.eup %786  ;;  %798 = vpow2.f32 %v392_v7 }
 0x1c2   : > { %v789_v3 = vpop.eup %788  ;;  %413 = vperm.xlu2 %783, %v1062_v1   ;;  %800 = vpow2.f32 %v394_v8 }
 0x1c3   : > { %v791_v4 = vpop.eup %790  ;;  %410 = vperm.xlu1 %782, %v789_v3  }
 0x1c4   : > { %407 = vperm.xlu0 %781, %v791_v4   ;;  %v793_v10 = vpop.eup %792 }
 0x1c5   : > { %v795_v11 = vpop.eup %794 }
 0x1c6   : > { %v797_v12 = vpop.eup %796 }
 0x1c7   : > { %v799_v13 = vpop.eup %798 }
 0x1c8   : > { %v801_v15 = vpop.eup %800 }
 0x1ca   : > { %416 = vperm.xlu2 %783, %v793_v10  }
 0x1cb   : > { %419 = vperm.xlu1 %782, %v795_v11  }
 0x1cc   : > { %428 = vperm.xlu0 %781, %v797_v12  }
 0x1d2   : > { %422 = vperm.xlu2 %783, %v799_v13  }
 0x1d3   : > { %425 = vperm.xlu1 %782, %v801_v15  }
 0x21c   : > { %v414_v18 = vpop.permute.xlu2 %413 }
 0x21d   : > { %v432_v35 = vperm.slane %v414_v18, %v1044_v9 }
 0x224   : > { %v417_v30 = vpop.permute.xlu2 %416 }
 0x225   : > { %v433_v38 = vperm.slane %v417_v30, %v1044_v9 }
 0x22c   : > { %v423_v39 = vpop.permute.xlu2 %422 }
 0x22d   : > { %v435_v43 = vperm.slane %v423_v39, %v1044_v9 }
 0x235   : > { %v411_v28 = vpop.permute.xlu1 %410 }
 0x236   : > { %v408_v29 = vpop.permute.xlu0 %407  ;;  %v431_v31 = vperm.slane %v411_v28, %v1044_v9 }
 0x237   : > { %v430_v32 = vperm.slane %v408_v29, %v1044_v9 }
 0x239   : > { %v438_v33 = vsel %vm338_vm1, %v431_v31, %v430_v32 }
 0x23a   : > { %v439_v36 = vsel %vm340_vm2, %v432_v35, %v438_v33 }
 0x23b   : > { %v440_v40 = vsel %vm342_vm3, %v433_v38, %v439_v36 }
 0x23d   : > { %v420_v34 = vpop.permute.xlu1 %419 }
 0x23e   : > { %v434_v37 = vperm.slane %v420_v34, %v1044_v9  ;;  %v429_v42 = vpop.permute.xlu0 %428 }
 0x23f   : > { %v437_v46 = vperm.slane %v429_v42, %v1044_v9 }
 0x240   : > { %v441_v41 = vsel %vm344_vm4, %v434_v37, %v440_v40 }
 0x241   : > { %v442_v47 = vsel %vm346_vm5, %v435_v43, %v441_v41 }
 0x245   : > { %v426_v44 = vpop.permute.xlu1 %425 }
 0x246   : > { %v436_v45 = vperm.slane %v426_v44, %v1044_v9 }
 0x248   : > { %v443_v48 = vsel %vm348_vm6, %v436_v45, %v442_v47 }
 0x249   : > { %v444_v49 = vsel %vm350_vm7, %v437_v46, %v443_v48 }
 0x24a   : > { %v446_v50 = vsel %vm353_vm8, %v444_v49, 0.0 }
 0x24b   : > { %447 = vadd.xlane.f32.xlu2 %v446_v50 }
 0x2be   : > { %v448_v51 = vpop.xlane.xlu2 %447 }
 0x2bf   : > { %802 = vrcp.f32 %v448_v51 }
 0x2c5   : > { %v803_v52 = vpop.eup %802 }
 0x2c6   : > { %v452_v53 = vperm.slane %v803_v52, 1  ;;  %v451_v54 = vperm.slane %v803_v52, 0  ;;  %v454_v57 = vperm.slane %v803_v52, 3  ;;  %v453_v9 = vperm.slane %v803_v52, 2 }
 0x2c7   : > { %v456_v60 = vperm.slane %v803_v52, 5  ;;  %v455_v61 = vperm.slane %v803_v52, 4  ;;  %v458_v0 = vperm.slane %v803_v52, 7  ;;  %v457_v2 = vperm.slane %v803_v52, 6 }
 0x2c8   : > { %v468_v55 = vmul.f32 %v789_v3, %v452_v53  ;;  %v467_v56 = vmul.f32 %v791_v4, %v451_v54  ;;  %v470_v58 = vmul.f32 %v793_v10, %v454_v57  ;;  %v469_v59 = vmul.f32 %v1062_v1, %v453_v9 }
 0x2c9   : > { %v472_v62 = vmul.f32 %v799_v13, %v456_v60  ;;  %v471_v63 = vmul.f32 %v795_v11, %v455_v61  ;;  %v474_v5 = vmul.f32 %v797_v12, %v458_v0  ;;  %v473_v3 = vmul.f32 %v801_v15, %v457_v2 }
 0x2ca   : > { %482 = vperm.xlu0 %781, %v468_v55   ;;  %477 = vperm.xlu1 %782, %v467_v56  }
 0x2d2   : > { %492 = vperm.xlu0 %781, %v470_v58   ;;  %487 = vperm.xlu1 %782, %v469_v59  }
 0x2da   : > { %502 = vperm.xlu0 %781, %v472_v62   ;;  %497 = vperm.xlu1 %782, %v471_v63  }
 0x2e2   : > { %512 = vperm.xlu0 %781, %v474_v5   ;;  %507 = vperm.xlu1 %782, %v473_v3  }
 0x33c   : > { %v483_v4 = vpop.permute.xlu0 %482  ;;  %v478_v6 = vpop.permute.xlu1 %477 }
 0x33d   : > { %v516_v7 = vmul.f32 %v677_v24, %v483_v4  ;;  %v515_v1 = vmul.f32 %v676_v19, %v478_v6 }
 0x33f   : > { %v529_v8 = vrot.slane %v516_v7, 4  ;;  %v523_v10 = vrot.slane %v515_v1, 4 }
 0x341   : > { %v530_v15 = vadd.f32 %v529_v8, %v516_v7  ;;  %v524_v28 = vadd.f32 %v523_v10, %v515_v1 }
 0x343   : > { %v531_v32 = vrot.slane %v530_v15, 2  ;;  %v525_v24 = vrot.slane %v524_v28, 2 }
 0x344   : > { %v493_v13 = vpop.permute.xlu0 %492  ;;  %v488_v11 = vpop.permute.xlu1 %487 }
 0x345   : > { %v518_v18 = vmul.f32 %v681_v26, %v493_v13  ;;  %v517_v12 = vmul.f32 %v680_v22, %v488_v11  ;;  %v532_v36 = vadd.f32 %v531_v32, %v530_v15  ;;  %v526_v17 = vadd.f32 %v525_v24, %v524_v28 }
 0x347   : > { %v541_v29 = vrot.slane %v518_v18, 4  ;;  %v535_v30 = vrot.slane %v517_v12, 4  ;;  %v533_v42 = vrot.slane %v532_v36, 1  ;;  %v527_v43 = vrot.slane %v526_v17, 1 }
 0x349   : > { %v536_v31 = vadd.f32 %v535_v30, %v517_v12  ;;  %v542_v33 = vadd.f32 %v541_v29, %v518_v18  ;;  %v534_v50 = vadd.f32 %v533_v42, %v532_v36  ;;  %v528_v51 = vadd.f32 %v527_v43, %v526_v17 }
 0x34b   : > { %v537_v14 = vrot.slane %v536_v31, 2  ;;  %v543_v22 = vrot.slane %v542_v33, 2  ;;  %v579_v59 = vsel %vm338_vm1, %v534_v50, %v528_v51 }
 0x34c   : > { %v503_v19 = vpop.permute.xlu0 %502  ;;  %v498_v34 = vpop.permute.xlu1 %497 }
 0x34d   : > { %v520_v35 = vmul.f32 %v685_v25, %v503_v19  ;;  %v519_v26 = vmul.f32 %v684_v21, %v498_v34  ;;  %v538_v37 = vadd.f32 %v537_v14, %v536_v31  ;;  %v544_v44 = vadd.f32 %v543_v22, %v542_v33 }
 0x34f   : > { %v553_v38 = vrot.slane %v520_v35, 4  ;;  %v547_v39 = vrot.slane %v519_v26, 4  ;;  %v539_v45 = vrot.slane %v538_v37, 1  ;;  %v545_v52 = vrot.slane %v544_v44, 1 }
 0x351   : > { %v554_v40 = vadd.f32 %v553_v38, %v520_v35  ;;  %v548_v41 = vadd.f32 %v547_v39, %v519_v26  ;;  %v540_v54 = vadd.f32 %v539_v45, %v538_v37  ;;  %v546_v60 = vadd.f32 %v545_v52, %v544_v44 }
 0x353   : > { %v555_v46 = vrot.slane %v554_v40, 2  ;;  %v549_v47 = vrot.slane %v548_v41, 2  ;;  %v580_v20 = vsel %vm340_vm2, %v540_v54, %v579_v59 }
 0x354   : > { %v513_v48 = vpop.permute.xlu0 %512  ;;  %v508_v25 = vpop.permute.xlu1 %507  ;;  %v581_v5 = vsel %vm342_vm3, %v546_v60, %v580_v20 }
 0x355   : > { %v550_v49 = vadd.f32 %v549_v47, %v548_v41  ;;  %v522_v16 = vmul.f32 %v689_v27, %v513_v48  ;;  %v521_v21 = vmul.f32 %v688_v23, %v508_v25  ;;  %v556_v53 = vadd.f32 %v555_v46, %v554_v40 }
 0x357   : > { %v551_v55 = vrot.slane %v550_v49, 1  ;;  %v565_v56 = vrot.slane %v522_v16, 4  ;;  %v559_v57 = vrot.slane %v521_v21, 4  ;;  %v557_v27 = vrot.slane %v556_v53, 1 }
 0x359   : > { %v566_v9 = vadd.f32 %v565_v56, %v522_v16  ;;  %v560_v58 = vadd.f32 %v559_v57, %v521_v21  ;;  %v552_v23 = vadd.f32 %v551_v55, %v550_v49  ;;  %v558_v2 = vadd.f32 %v557_v27, %v556_v53 }
 0x35b   : > { %v567_v61 = vrot.slane %v566_v9, 2  ;;  %v561_v62 = vrot.slane %v560_v58, 2  ;;  %v582_v3 = vsel %vm344_vm4, %v552_v23, %v581_v5 }
 0x35c   : > { %v583_v8 = vsel %vm346_vm5, %v558_v2, %v582_v3 }
 0x35d   : > { %v568_v63 = vadd.f32 %v567_v61, %v566_v9  ;;  %v562_v0 = vadd.f32 %v561_v62, %v560_v58 }
 0x35f   : > { %v569_v4 = vrot.slane %v568_v63, 1  ;;  %v563_v6 = vrot.slane %v562_v0, 1 }
 0x361   : > { %v570_v7 = vadd.f32 %v569_v4, %v568_v63  ;;  %v564_v1 = vadd.f32 %v563_v6, %v562_v0 }
 0x363   : > { %v584_v10 = vsel %vm348_vm6, %v564_v1, %v583_v8 }
 0x364   : > { %v585_v13 = vsel %vm350_vm7, %v570_v7, %v584_v10 }
 0x365   : > { %587 = vst [vmem:[%s191_s14] sm:$0xff] %v585_v13 }
 0x366   : > { %831 = shalt.err (!%p828_p3)
}
 0x367   : > { %741 = dma.vmem_to_hbm [thread:$0]  (%p931_p5), %s602_s20, 128, %s604_s22, %s589_s13  }
 0x368 PF: > { %p747_p4 = scmp.ge.s32.totalorder %s866_s18, 2  ;;  %s615_s6 = sand.u32 1, %s854_s15  }
 0x369   : > { %s616_s7 = scalar_lea.sflag [#allocation3], %s615_s6 }
 0x36a   : > { %p744_p7 = pnand %p747_p4, %p935_p6 }
 0x36c   : > { %p745_p8 = pneg %p744_p7 }
 0x36e   : > { %849 = dma.done.wait (%p745_p8), %s616_s7, 128  }
 0x36f   : > { %851 = vsyncadd (%p745_p8), %s616_s7, 4294967168  ;;  %p14_p9 = scmp.ge.s32.totalorder %s917_s21, 4   ;;  %s1148_s15 = smov %s858_s16 }
 0x370   : > { %s1149_s16 = smov %s862_s17  ;;  %s1150_s17 = smov %s929_s24 }
 0x371   : > { %s1151_s18 = smov %s917_s21  ;;  %16 = sbr.rel (!%p14_p9) target bundleno = 3 (0x3), region = 71 }
 0x376   :  { %622 = vsyncpa [#allocation3], 1 }
 0x377   :  { %624 = vsyncpa [#allocation3 + $0x1], 1 }

</bundles_post_ra>
